<compile_context>
chip_gen: v7x
topology: tpu7x:2x2x1
jax: 0.10.0
libtpu: 0.0.40
codegen_flags: <defaults>
</compile_context>

<pallas_src>
import jax
import jax.numpy as jnp
from jax.experimental import pallas as pl
from jax.experimental.pallas import tpu as pltpu

LANES = 128  # padded hidden/output feature width (size=32, ac_dim=4 << 128)


def _round_up(x, m):
    return ((x + m - 1) // m) * m


def mlp_policy_kernel(obs_ref, w1_ref, w23_ref, b_ref, out_ref):
    # obs_ref: (TB, ob_dim_p) f32      w1_ref : (ob_dim_p, 128) bf16
    # w23_ref: (2, 128, 128)  bf16     b_ref  : (3, 1, 128)     f32
    x = obs_ref[...].astype(jnp.bfloat16)

    # Hidden layer 1: Linear + Tanh (MXU bf16, f32 accumulate; tanh on EUP in f32)
    h = jnp.dot(x, w1_ref[...], preferred_element_type=jnp.float32) + b_ref[0]
    h = jnp.tanh(h)

    # Hidden layer 2: Linear + Tanh
    h = jnp.dot(h.astype(jnp.bfloat16), w23_ref[0],
                preferred_element_type=jnp.float32) + b_ref[1]
    h = jnp.tanh(h)

    # Output head: Linear (identity) -> Gaussian mean. Lane-dense (TB,128) store;
    # padded lanes are exactly zero (zero weight cols / zero bias padding).
    out_ref[...] = jnp.dot(h.astype(jnp.bfloat16), w23_ref[1],
                           preferred_element_type=jnp.float32) + b_ref[2]


def pack_params(params, lanes=LANES):
    """Pack (w1,b1,w2,b2,w3,b3) into w1 (bf16), a w2/w3 bf16 slab and an f32 bias slab."""
    w1, b1, w2, b2, w3, b3 = params
    ob_dim = w1.shape[0]
    ob_dim_p = _round_up(ob_dim, 16)  # bf16 sublane tile alignment

    w1_p = (jnp.zeros((ob_dim_p, lanes), jnp.float32)
            .at[:ob_dim, : w1.shape[1]].set(w1).astype(jnp.bfloat16))

    def pad_w(w):
        out = jnp.zeros((lanes, lanes), jnp.float32)
        return out.at[: w.shape[0], : w.shape[1]].set(w)

    def pad_b(b):
        b = b.reshape(1, -1)
        out = jnp.zeros((1, lanes), jnp.float32)
        return out.at[:, : b.shape[1]].set(b)

    w23_slab = jnp.stack([pad_w(w2), pad_w(w3)]).astype(jnp.bfloat16)  # (2,128,128)
    b_slab = jnp.stack([pad_b(b1), pad_b(b2), pad_b(b3)])              # (3,1,128) f32
    return w1_p, w23_slab, b_slab


def mlp_policy_forward(obs, params, *, block_rows=1024):
    """Pallas forward pass: returns the mean action, shape [B, ac_dim]."""
    B, ob_dim = obs.shape
    ac_dim = params[5].reshape(-1).shape[0]  # b3

    w1_p, w23_slab, b_slab = pack_params(params)
    ob_dim_p = w1_p.shape[0]
    D = w23_slab.shape[-1]

    # Batch tile: one tile when the batch fits (no over-padding of small batches),
    # otherwise block_rows-sized tiles amortizing per-step overhead (~0.35us).
    if B <= block_rows:
        TB = _round_up(B, 8)
    else:
        TB = block_rows
    B_pad = _round_up(B, TB)

    obs_p = obs
    if B_pad != B or ob_dim_p != ob_dim:
        obs_p = jnp.zeros((B_pad, ob_dim_p), obs.dtype).at[:B, :ob_dim].set(obs)

    out = pl.pallas_call(
        mlp_policy_kernel,
        out_shape=jax.ShapeDtypeStruct((B_pad, D), jnp.float32),
        grid=(B_pad // TB,),
        in_specs=[
            pl.BlockSpec((TB, ob_dim_p), lambda i: (i, 0)),     # obs tile (pipelined)
            pl.BlockSpec((ob_dim_p, D), lambda i: (0, 0)),      # w1: VMEM-resident
            pl.BlockSpec((2, D, D), lambda i: (0, 0, 0)),       # w2/w3 slab: VMEM-resident
            pl.BlockSpec((3, 1, D), lambda i: (0, 0, 0)),       # biases: VMEM-resident
        ],
        out_specs=pl.BlockSpec((TB, D), lambda i: (i, 0)),      # lane-dense output tile
        compiler_params=pltpu.CompilerParams(
            dimension_semantics=("parallel",)),                 # v7x: shard batch over 2 TCs
    )(obs_p, w1_p, w23_slab, b_slab)

    return out[:B, :ac_dim]


def init_mlp_params(key, ob_dim, ac_dim, size):
    """Deterministic init mimicking torch.nn.Linear default U[-1/sqrt(fan_in), 1/sqrt(fan_in)]."""
    dims = [(ob_dim, size), (size, size), (size, ac_dim)]
    params = []
    for (fan_in, fan_out) in dims:
        key, kw, kb = jax.random.split(key, 3)
        bound = 1.0 / jnp.sqrt(jnp.float32(fan_in))
        w = jax.random.uniform(kw, (fan_in, fan_out), jnp.float32, -bound, bound)
        b = jax.random.uniform(kb, (1, fan_out), jnp.float32, -bound, bound)
        params.extend([w, b])
    return tuple(params)


def reference_forward(obs, params):
    w1, b1, w2, b2, w3, b3 = params
    h = jnp.tanh(obs @ w1 + b1)
    h = jnp.tanh(h @ w2 + b2)
    return h @ w3 + b3


if __name__ == "__main__":
    # MLPPolicy(ac_dim=4, ob_dim=16, n_layers=2, size=32, discrete=False)
    ob_dim, ac_dim, size = 16, 4, 32

    key = jax.random.PRNGKey(0)
    key, k_obs = jax.random.split(key)
    params = init_mlp_params(key, ob_dim, ac_dim, size)
    # logstd exists on the module but is unused in forward(); kept for parity.
    logstd = jnp.zeros((ac_dim,), jnp.float32)  # TODO(synk): unused in forward semantics

    # Small single-tile batch.
    B_small = 8
    obs_small = jax.random.normal(k_obs, (B_small, ob_dim), jnp.float32)
    mean_small = jax.block_until_ready(mlp_policy_forward(obs_small, params))
    ref_small = reference_forward(obs_small, params)
    assert mean_small.shape == (B_small, ac_dim)
    assert jnp.allclose(mean_small, ref_small, atol=2e-2, rtol=2e-2)  # bf16 matmul tolerance

    # Multi-tile batch: exercises the grid, row padding, and the [:B, :ac_dim] slice.
    B_big = 520
    key, k_big = jax.random.split(key)
    obs_big = jax.random.normal(k_big, (B_big, ob_dim), jnp.float32)
    mean_big = jax.block_until_ready(
        mlp_policy_forward(obs_big, params, block_rows=256))  # 3 tiles, padded last tile
    ref_big = reference_forward(obs_big, params)
    assert mean_big.shape == (B_big, ac_dim)
    assert jnp.allclose(mean_big, ref_big, atol=2e-2, rtol=2e-2)

    print("KERNEL_OK")
</pallas_src>

<mosaic_0001>
module attributes {stable_mosaic.version = 11 : i64} {
  func.func @mlp_policy_kernel(%arg0: i32, %arg1: memref<8x16xf32, #tpu.memory_space<vmem>>, %arg2: memref<16x128xbf16, #tpu.memory_space<vmem>>, %arg3: memref<2x128x128xbf16, #tpu.memory_space<vmem>>, %arg4: memref<3x1x128xf32, #tpu.memory_space<vmem>>, %arg5: memref<8x128xf32, #tpu.memory_space<vmem>>) attributes {dimension_semantics = [#tpu.dimension_semantics<parallel>], iteration_bounds = array<i64: 1>, scalar_prefetch = 0 : i64, scratch_operands = 0 : i64, tpu.core_type = #tpu.core_type<tc>, window_params = [{transform_indices = @transform_0, window_bounds = array<i64: 8, 16>}, {pipeline_mode = #tpu.pipeline_mode<synchronous>, transform_indices = @transform_1, window_bounds = array<i64: 16, 128>}, {pipeline_mode = #tpu.pipeline_mode<synchronous>, transform_indices = @transform_2, window_bounds = array<i64: 2, 128, 128>}, {pipeline_mode = #tpu.pipeline_mode<synchronous>, transform_indices = @transform_3, window_bounds = array<i64: 3, 1, 128>}, {transform_indices = @transform_4, window_bounds = array<i64: 8, 128>}]} {
    %c0 = arith.constant 0 : index
    %c0_0 = arith.constant 0 : index
    %0 = vector.load %arg1[%c0, %c0_0] : memref<8x16xf32, #tpu.memory_space<vmem>>, vector<8x16xf32>
    %1 = arith.truncf %0 : vector<8x16xf32> to vector<8x16xbf16>
    %c0_1 = arith.constant 0 : index
    %c0_2 = arith.constant 0 : index
    %2 = vector.load %arg2[%c0_1, %c0_2] : memref<16x128xbf16, #tpu.memory_space<vmem>>, vector<16x128xbf16>
    %cst = arith.constant dense<0.000000e+00> : vector<8x128xf32>
    %3 = tpu.matmul %1, %2, %cst {dimension_numbers = #tpu.dot_dimension_numbers<[1], [0], [0], [1], [0, 0, 1, 1], [], []>} : vector<8x16xbf16>, vector<16x128xbf16>, vector<8x128xf32> -> vector<8x128xf32>
    %c0_3 = arith.constant 0 : index
    %c0_4 = arith.constant 0 : index
    %c0_5 = arith.constant 0 : index
    %4 = vector.load %arg4[%c0_3, %c0_4, %c0_5] : memref<3x1x128xf32, #tpu.memory_space<vmem>>, vector<1x1x128xf32>
    %5 = vector.shape_cast %4 : vector<1x1x128xf32> to vector<1x128xf32>
    %6 = vector.broadcast %5 : vector<1x128xf32> to vector<8x128xf32>
    %7 = arith.addf %3, %6 : vector<8x128xf32>
    %8 = math.tanh %7 : vector<8x128xf32>
    %9 = arith.truncf %8 : vector<8x128xf32> to vector<8x128xbf16>
    %c0_6 = arith.constant 0 : index
    %c0_7 = arith.constant 0 : index
    %c0_8 = arith.constant 0 : index
    %10 = vector.load %arg3[%c0_6, %c0_7, %c0_8] : memref<2x128x128xbf16, #tpu.memory_space<vmem>>, vector<1x128x128xbf16>
    %11 = vector.shape_cast %10 : vector<1x128x128xbf16> to vector<128x128xbf16>
    %cst_9 = arith.constant dense<0.000000e+00> : vector<8x128xf32>
    %12 = tpu.matmul %9, %11, %cst_9 {dimension_numbers = #tpu.dot_dimension_numbers<[1], [0], [0], [1], [0, 0, 1, 1], [], []>} : vector<8x128xbf16>, vector<128x128xbf16>, vector<8x128xf32> -> vector<8x128xf32>
    %c1 = arith.constant 1 : index
    %c0_10 = arith.constant 0 : index
    %c0_11 = arith.constant 0 : index
    %13 = vector.load %arg4[%c1, %c0_10, %c0_11] : memref<3x1x128xf32, #tpu.memory_space<vmem>>, vector<1x1x128xf32>
    %14 = vector.shape_cast %13 : vector<1x1x128xf32> to vector<1x128xf32>
    %15 = vector.broadcast %14 : vector<1x128xf32> to vector<8x128xf32>
    %16 = arith.addf %12, %15 : vector<8x128xf32>
    %17 = math.tanh %16 : vector<8x128xf32>
    %18 = arith.truncf %17 : vector<8x128xf32> to vector<8x128xbf16>
    %c1_12 = arith.constant 1 : index
    %c0_13 = arith.constant 0 : index
    %c0_14 = arith.constant 0 : index
    %19 = vector.load %arg3[%c1_12, %c0_13, %c0_14] : memref<2x128x128xbf16, #tpu.memory_space<vmem>>, vector<1x128x128xbf16>
    %20 = vector.shape_cast %19 : vector<1x128x128xbf16> to vector<128x128xbf16>
    %cst_15 = arith.constant dense<0.000000e+00> : vector<8x128xf32>
    %21 = tpu.matmul %18, %20, %cst_15 {dimension_numbers = #tpu.dot_dimension_numbers<[1], [0], [0], [1], [0, 0, 1, 1], [], []>} : vector<8x128xbf16>, vector<128x128xbf16>, vector<8x128xf32> -> vector<8x128xf32>
    %c2 = arith.constant 2 : index
    %c0_16 = arith.constant 0 : index
    %c0_17 = arith.constant 0 : index
    %22 = vector.load %arg4[%c2, %c0_16, %c0_17] : memref<3x1x128xf32, #tpu.memory_space<vmem>>, vector<1x1x128xf32>
    %23 = vector.shape_cast %22 : vector<1x1x128xf32> to vector<1x128xf32>
    %24 = vector.broadcast %23 : vector<1x128xf32> to vector<8x128xf32>
    %25 = arith.addf %21, %24 : vector<8x128xf32>
    %c0_18 = arith.constant 0 : index
    %c0_19 = arith.constant 0 : index
    %26 = vector.load %arg5[%c0_18, %c0_19] : memref<8x128xf32, #tpu.memory_space<vmem>>, vector<8x128xf32>
    tpu.vector_store %arg5[%c0_18, %c0_19], %25 {strides = array<i32>} : memref<8x128xf32, #tpu.memory_space<vmem>>, vector<8x128xf32>,
    return
  }
  func.func @transform_0(%arg0: i32) -> (i32, i32) {
    %c0_i32 = arith.constant 0 : i32
    %c0_i32_0 = arith.constant 0 : i32
    return %arg0, %c0_i32 : i32, i32
  }
  func.func @transform_1(%arg0: i32) -> (i32, i32) {
    %c0_i32 = arith.constant 0 : i32
    %c0_i32_0 = arith.constant 0 : i32
    %c0_i32_1 = arith.constant 0 : i32
    return %c0_i32, %c0_i32_0 : i32, i32
  }
  func.func @transform_2(%arg0: i32) -> (i32, i32, i32) {
    %c0_i32 = arith.constant 0 : i32
    %c0_i32_0 = arith.constant 0 : i32
    %c0_i32_1 = arith.constant 0 : i32
    %c0_i32_2 = arith.constant 0 : i32
    return %c0_i32, %c0_i32_0, %c0_i32_1 : i32, i32, i32
  }
  func.func @transform_3(%arg0: i32) -> (i32, i32, i32) {
    %c0_i32 = arith.constant 0 : i32
    %c0_i32_0 = arith.constant 0 : i32
    %c0_i32_1 = arith.constant 0 : i32
    %c0_i32_2 = arith.constant 0 : i32
    return %c0_i32, %c0_i32_0, %c0_i32_1 : i32, i32, i32
  }
  func.func @transform_4(%arg0: i32) -> (i32, i32) {
    %c0_i32 = arith.constant 0 : i32
    %c0_i32_0 = arith.constant 0 : i32
    return %arg0, %c0_i32 : i32, i32
  }
}

</mosaic_0001>

<bundles_post_ra>
// kernel: tpu_custom_call.1
= control target key start
LH: loop header
LB: loop body
LE: loop exit
PB: predicated region body
PF: predicated region fallthrough
CT: control target
= control target key end

     0   :  { %9 = vsyncpa [#allocation3], 0  ;;  %s696_s0 = inlined_call_operand.hbm [shape: f32[8,16], index: 0, kind: input, shape index: {}]   ;;  %s697_s1 = inlined_call_operand.hbm [shape: bf16[16,128], index: 1, kind: input, shape index: {}]   ;;  %s698_s2 = inlined_call_operand.hbm [shape: bf16[2,128,128], index: 2, kind: input, shape index: {}]   ;;  %s699_s3 = inlined_call_operand.vmem [shape: f32[3,1,128], index: 3, kind: input, shape index: {}]   ;;  %s700_s4 = inlined_call_operand.hbm [shape: f32[8,128], index: 4, kind: output, shape index: {}]  }
   0x1   :  { %10 = vsyncpa [#allocation6], 0 }
   0x2   :  { %11 = vsyncpa [#allocation4], 0  ;;  %s577_s15 = smov [#allocation5]   ;;  %s483_s19 = scalar_lea.hbm %s697_s1, 128 }
   0x3   :  { %s27_s16 = sshll.u32 %s577_s15, 4  ;;  %p484_p0 = scmp.ne.s32.totalorder %s697_s1, %s483_s19  ;;  %s28_s16 = int_to_ptr.vmem [resolvable:$true] %s27_s16 }
   0x4   :  { %p487_p1 = scmp.lt.u32.totalorder %s483_s19, %s697_s1 }
   0x6   :  { %p489_p2 = pnand %p487_p1, %p484_p0 }
   0x8   :  { %492 = shalt.err (!%p489_p2)
}
   0x9   :  { %s493_s24 = scalar_lea.vmem %s28_s16, 128  ;;  %p498_p4 = scmp.lt.s32.totalorder %s28_s16, %s28_s16 }
   0xa   :  { %p494_p3 = scmp.ne.s32.totalorder %s28_s16, %s493_s24  ;;  %p499_p5 = scmp.lt.s32.totalorder %s493_s24, %s493_s24 }
   0xc   :  { %p500_p6 = por %p499_p5, %p498_p4 }
   0xe   :  { %p501_p7 = pnand %p500_p6, %p494_p3 }
  0x10   :  { %504 = shalt.err (!%p501_p7)
}
  0x11   :  { %s578_s25 = smov 64   ;;  %s579_s26 = smov 4  }
  0x12   :  { %33 = dma.hbm_to_vmem [thread:$0]  %s697_s1, 128, %s28_s16, [#allocation6], %s578_s25, %s578_s25, %s579_s26  }
  0x13   :  { %s580_s29 = smov [#allocation2]   ;;  %s581_s5 = smov [#allocation7]  }
  0x14   :  { %s18_s30 = sshll.u32 %s580_s29, 4  ;;  %s39_s6 = sshll.u32 %s581_s5, 4  ;;  %s19_s30 = int_to_ptr.vmem [resolvable:$true] %s18_s30  ;;  %s40_s6 = int_to_ptr.vmem [resolvable:$true] %s39_s6 }
  0x15   :  { %s505_s9 = scalar_lea.hbm %s696_s0, 128 }
  0x16   :  { %p506_p8 = scmp.ne.s32.totalorder %s696_s0, %s505_s9  ;;  %p509_p9 = scmp.lt.u32.totalorder %s505_s9, %s696_s0 }
  0x18   :  { %p511_p10 = pnand %p509_p9, %p506_p8 }
  0x1a   :  { %514 = shalt.err (!%p511_p10)
}
  0x1b   :  { %s515_s1 = scalar_lea.vmem %s19_s30, 128  ;;  %p520_p12 = scmp.lt.s32.totalorder %s19_s30, %s19_s30 }
  0x1c   :  { %p516_p11 = scmp.ne.s32.totalorder %s19_s30, %s515_s1  ;;  %p521_p13 = scmp.lt.s32.totalorder %s515_s1, %s515_s1 }
  0x1e   :  { %p522_p0 = por %p521_p13, %p520_p12 }
  0x20   :  { %p523_p1 = pnand %p522_p0, %p516_p11 }
  0x22   :  { %526 = shalt.err (!%p523_p1)
}
  0x23   :  { %21 = dma.hbm_to_vmem [thread:$0]  %s696_s0, 128, %s19_s30, [#allocation3]  }
  0x24   :  { %s527_s18 = scalar_lea.hbm %s698_s2, 2048 }
  0x25   :  { %p528_p2 = scmp.ne.s32.totalorder %s698_s2, %s527_s18  ;;  %p531_p3 = scmp.lt.u32.totalorder %s527_s18, %s698_s2 }
  0x27   :  { %p533_p4 = pnand %p531_p3, %p528_p2 }
  0x29   :  { %536 = shalt.err (!%p533_p4)
}
  0x2a   :  { %s537_s23 = scalar_lea.vmem %s40_s6, 2048  ;;  %p542_p6 = scmp.lt.s32.totalorder %s40_s6, %s40_s6 }
  0x2b   :  { %p538_p5 = scmp.ne.s32.totalorder %s40_s6, %s537_s23  ;;  %p543_p7 = scmp.lt.s32.totalorder %s537_s23, %s537_s23 }
  0x2d   :  { %p544_p8 = por %p543_p7, %p542_p6 }
  0x2f   :  { %p545_p9 = pnand %p544_p8, %p538_p5 }
  0x31   :  { %548 = shalt.err (!%p545_p9)
}
  0x32   :  { %45 = dma.hbm_to_vmem [thread:$0]  %s698_s2, 2048, %s40_s6, [#allocation6], %s578_s25, %s578_s25, %s579_s26  }
  0x33   :  { %571 = dma.done.wait [#allocation3], 128  }
  0x34   :  { %572 = vsyncadd [#allocation3], 4294967168 }
  0x35   :  { %573 = dma.done.wait [#allocation6], 2176  }
  0x36   :  { %574 = vsyncadd [#allocation6], 4294965120  ;;  %v582_v0 = vmov 0.0   ;;  %vm583_vm0 = vmmov 0   ;;  %v462_v1 = vld [vmem:[#allocation5] sm:$0xff]   ;;  %v58_v2 = vld [vmem:[#allocation2] sm:$0xff] }
  0x37   :  { %408 = vmatprep.subr.bf16.mxu0 %v582_v0  ;;  %410 = vmatprep.mubr.msk.bf16.mxu0 %vm583_vm0, %v582_v0  ;;  %v59_v3 = vpack.c.bf16 %v58_v2, %v58_v2  ;;  %vm75_vm1 = vcmask 130048   ;;  %v463_v4 = vld [vmem:[#allocation7] sm:$0xff]   ;;  %v464_v5 = vld [vmem:[#allocation7 + $0x8] sm:$0xff]   ;;  %v465_v6 = vld [vmem:[#allocation7 + $0x10] sm:$0xff]   ;;  %s584_s30 = smov [#allocation8]  }
  0x38   :  { %414 = vmatprep.subr.bf16.mxu1 %v582_v0  ;;  %430 = vmatprep.mubr.msk.bf16.mxu1 %vm583_vm0, %v582_v0  ;;  %v466_v7 = vld [vmem:[#allocation7 + $0x18] sm:$0xff]   ;;  %v467_v8 = vld [vmem:[#allocation7 + $0x20] sm:$0xff]   ;;  %v468_v9 = vld [vmem:[#allocation7 + $0x28] sm:$0xff]   ;;  %s355_s5 = sshll.u32 %s584_s30, 4  ;;  %s356_s5 = int_to_ptr.vmem [resolvable:$true] %s355_s5 }
  0x39   :  { %409 = vmatpush3.bf16.msra.mxu0 %v462_v1  ;;  %415 = vmatpush3.bf16.msra.mxu1 %v463_v4  ;;  %v469_v10 = vld [vmem:[#allocation7 + $0x30] sm:$0xff]   ;;  %v470_v11 = vld [vmem:[#allocation7 + $0x38] sm:$0xff]   ;;  %v471_v12 = vld [vmem:[#allocation7 + $0x40] sm:$0xff]   ;;  %s549_s6 = scalar_lea.vmem %s356_s5, 128  ;;  %p554_p11 = scmp.lt.s32.totalorder %s356_s5, %s356_s5 }
  0x3a   :  { %434 = vmatprep.subr.bf16.mxu0 %v582_v0  ;;  %416 = vmatprep.subr.bf16.mxu1 %v582_v0  ;;  %v472_v13 = vld [vmem:[#allocation7 + $0x48] sm:$0xff]   ;;  %v473_v14 = vld [vmem:[#allocation7 + $0x50] sm:$0xff]   ;;  %v474_v15 = vld [vmem:[#allocation7 + $0x58] sm:$0xff]   ;;  %p550_p10 = scmp.ne.s32.totalorder %s356_s5, %s549_s6  ;;  %p555_p12 = scmp.lt.s32.totalorder %s549_s6, %s549_s6 }
  0x3b   :  { %v365_v16 = vld [vmem:[%s699_s3] ss:$0 sm:$0xff]  ;;  %v475_v24 = vld [vmem:[#allocation7 + $0x60] sm:$0xff]   ;;  %v476_v25 = vld [vmem:[#allocation7 + $0x68] sm:$0xff]  }
  0x3c   :  { %411 = vmatmul.mubr.msk.bf16.vlgmr.msra.gmra.mrb[0].mxu0 %vm75_vm1, %v59_v3  ;;  %v477_v26 = vld [vmem:[#allocation7 + $0x70] sm:$0xff]   ;;  %v478_v27 = vld [vmem:[#allocation7 + $0x78] sm:$0xff]   ;;  %p556_p13 = por %p555_p12, %p554_p11 }
  0x3d   :  { %450 = vmatprep.mubr.msk.bf16.mxu0 %vm583_vm0, %v582_v0  ;;  %417 = vmatpush3.bf16.msra.mxu1 %v464_v5  ;;  %v369_v28 = vld [vmem:[%s699_s3 + $0x1] ss:$0 sm:$0xff]  ;;  %v379_v36 = vld [vmem:[%s699_s3 + $0x2] ss:$0 sm:$0xff] }
  0x3e   :  { %418 = vmatprep.subr.bf16.mxu1 %v582_v0  ;;  %435 = vmatpush3.bf16.msra.mxu0 %v471_v12  ;;  %p557_p0 = pnand %p556_p13, %p550_p10 }
  0x3f   :  { %436 = vmatprep.subr.bf16.mxu0 %v582_v0 }
  0x41   :  { %419 = vmatpush3.bf16.msra.mxu1 %v465_v6 }
  0x42   :  { %420 = vmatprep.subr.bf16.mxu1 %v582_v0  ;;  %437 = vmatpush3.bf16.msra.mxu0 %v472_v13 }
  0x43   :  { %438 = vmatprep.subr.bf16.mxu0 %v582_v0 }
  0x45   :  { %421 = vmatpush3.bf16.msra.mxu1 %v466_v7 }
  0x46   :  { %422 = vmatprep.subr.bf16.mxu1 %v582_v0  ;;  %439 = vmatpush3.bf16.msra.mxu0 %v473_v14 }
  0x47   :  { %440 = vmatprep.subr.bf16.mxu0 %v582_v0 }
  0x49   :  { %423 = vmatpush3.bf16.msra.mxu1 %v467_v8 }
  0x4a   :  { %424 = vmatprep.subr.bf16.mxu1 %v582_v0  ;;  %441 = vmatpush3.bf16.msra.mxu0 %v474_v15 }
  0x4b   :  { %442 = vmatprep.subr.bf16.mxu0 %v582_v0 }
  0x4d   :  { %425 = vmatpush3.bf16.msra.mxu1 %v468_v9 }
  0x4e   :  { %426 = vmatprep.subr.bf16.mxu1 %v582_v0  ;;  %443 = vmatpush3.bf16.msra.mxu0 %v475_v24 }
  0x4f   :  { %444 = vmatprep.subr.bf16.mxu0 %v582_v0 }
  0x51   :  { %427 = vmatpush3.bf16.msra.mxu1 %v469_v10 }
  0x52   :  { %428 = vmatprep.subr.bf16.mxu1 %v582_v0  ;;  %445 = vmatpush3.bf16.msra.mxu0 %v476_v25 }
  0x53   :  { %446 = vmatprep.subr.bf16.mxu0 %v582_v0 }
  0x55   :  { %429 = vmatpush3.bf16.msra.mxu1 %v470_v11 }
  0x56   :  { %447 = vmatpush3.bf16.msra.mxu0 %v477_v26 }
  0x57   :  { %448 = vmatprep.subr.bf16.mxu0 %v582_v0 }
  0x5a   :  { %449 = vmatpush3.bf16.msra.mxu0 %v478_v27 }
 0x10f   :  { %v113_v17 = vpop.f32.mrb[0].mxu0 }
 0x110   :  { %v114_v18 = vadd.f32 %v365_v16, %v113_v17  ;;  %v412_v19 = vpop.f32.mrb[1].mxu0 }
 0x111   :  { %v116_v20 = vpop.f32.mrb[2].mxu0 }
 0x112   :  { %479 = vtanh.f32 %v114_v18  ;;  %v413_v21 = vpop.f32.mrb[3].mxu0 }
 0x11c   :  { %v480_v22 = vpop.eup %479 }
 0x11d   :  { %v120_v23 = vpack.c.bf16 %v480_v22, %v480_v22 }
 0x11f   :  { %431 = vmatmul.mubr.bf16.vlgmr.msra.gmra.mrb[0].mxu1 %v120_v23 }
 0x1f2   :  { %v227_v29 = vpop.f32.mrb[0].mxu1 }
 0x1f3   :  { %v228_v30 = vadd.f32 %v369_v28, %v227_v29  ;;  %v432_v31 = vpop.f32.mrb[1].mxu1 }
 0x1f4   :  { %v230_v32 = vpop.f32.mrb[2].mxu1 }
 0x1f5   :  { %481 = vtanh.f32 %v228_v30  ;;  %v433_v33 = vpop.f32.mrb[3].mxu1 }
 0x1ff   :  { %v482_v34 = vpop.eup %481 }
 0x200   :  { %v234_v35 = vpack.c.bf16 %v482_v34, %v482_v34 }
 0x202   :  { %451 = vmatmul.mubr.bf16.vlgmr.msra.gmra.mrb[4].mxu0 %v234_v35 }
 0x2d5   :  { %v342_v37 = vpop.f32.mrb[4].mxu0 }
 0x2d6   :  { %v343_v38 = vadd.f32 %v379_v36, %v342_v37  ;;  %v452_v39 = vpop.f32.mrb[5].mxu0 }
 0x2d7   :  { %v345_v40 = vpop.f32.mrb[6].mxu0 }
 0x2d8   :  { %348 = vst [vmem:[#allocation8] sm:$0xff] %v343_v38  ;;  %v453_v41 = vpop.f32.mrb[7].mxu0 }
 0x2d9   :  { %560 = shalt.err (!%p557_p0)
}
 0x2da   :  { %s561_s3 = scalar_lea.hbm %s700_s4, 128 }
 0x2db   :  { %p562_p1 = scmp.ne.s32.totalorder %s700_s4, %s561_s3  ;;  %p565_p2 = scmp.lt.u32.totalorder %s561_s3, %s700_s4 }
 0x2dd   :  { %p567_p3 = pnand %p565_p2, %p562_p1 }
 0x2df   :  { %570 = shalt.err (!%p567_p3)
}
 0x2e0   :  { %358 = dma.vmem_to_hbm [thread:$0]  %s356_s5, 128, %s700_s4, [#allocation4]  }
 0x2e1   :  { %575 = dma.done.wait [#allocation4], 128  }
 0x2e2   :  { %576 = vsyncadd [#allocation4], 4294967168 }
 0x2e3   :  { %362 = vsyncpa [#allocation3], 1 }
 0x2e4   :  { %363 = vsyncpa [#allocation6], 1 }
 0x2e5   :  { %364 = vsyncpa [#allocation4], 1 }

</bundles_post_ra>
